<compile_context>
chip_gen: v5e
topology: v5e:2x2
jax: 0.10.0
libtpu: 0.0.40
codegen_flags: <defaults>
</compile_context>

<pallas_src>
import functools
import math

import jax
import jax.numpy as jnp
from jax.experimental import pallas as pl
from jax.experimental.pallas import tpu as pltpu


# ----------------------------- tiling helper -------------------------------

def _pick_tile(dim, target, quantum):
    """Largest multiple of `quantum` that divides `dim` and is <= target (or dim)."""
    if dim <= target:
        return dim
    t = (target // quantum) * quantum
    while t >= quantum:
        if dim % t == 0:
            return t
        t -= quantum
    return dim


_MM_SEM = pltpu.CompilerParams(
    dimension_semantics=("parallel", "parallel", "arbitrary"))
_ROW_SEM = pltpu.CompilerParams(dimension_semantics=("parallel",))


# ----------------------------- RMS scale (per-row 1/rms) -------------------

def _rms_scale_kernel(x_ref, o_ref, *, eps):
    x = x_ref[...].astype(jnp.float32)
    var = jnp.mean(x * x, axis=-1, keepdims=True)
    o_ref[...] = jax.lax.rsqrt(var + eps)


def rms_scale(x, eps):
    """x: (M, D) bf16 -> (M, 1) f32 inverse RMS per row."""
    M, D = x.shape
    tm = _pick_tile(M, 256, 8)
    return pl.pallas_call(
        functools.partial(_rms_scale_kernel, eps=eps),
        out_shape=jax.ShapeDtypeStruct((M, 1), jnp.float32),
        grid=(M // tm,),
        in_specs=[pl.BlockSpec((tm, D), lambda i: (i, 0))],
        out_specs=pl.BlockSpec((tm, 1), lambda i: (i, 0)),
        compiler_params=_ROW_SEM,
    )(x)


# ----------------------------- full RMSNorm (final norm) -------------------

def _rmsnorm_kernel(x_ref, g_ref, o_ref, *, eps):
    x = x_ref[...].astype(jnp.float32)
    var = jnp.mean(x * x, axis=-1, keepdims=True)
    normed = x * jax.lax.rsqrt(var + eps)
    o_ref[...] = (normed * g_ref[...].astype(jnp.float32)).astype(o_ref.dtype)


def rmsnorm(x, gamma, eps):
    M, D = x.shape
    tm = _pick_tile(M, 256, 8)
    return pl.pallas_call(
        functools.partial(_rmsnorm_kernel, eps=eps),
        out_shape=jax.ShapeDtypeStruct((M, D), x.dtype),
        grid=(M // tm,),
        in_specs=[pl.BlockSpec((tm, D), lambda i: (i, 0)),
                  pl.BlockSpec((1, D), lambda i: (0, 0))],
        out_specs=pl.BlockSpec((tm, D), lambda i: (i, 0)),
        compiler_params=_ROW_SEM,
    )(x, gamma.reshape(1, D))


# ----------------------------- fused RMSNorm + matmul ----------------------

def _norm_matmul_kernel(x_ref, s_ref, g_ref, w_ref, o_ref, acc_ref):
    k = pl.program_id(2)

    @pl.when(k == 0)
    def _():
        acc_ref[...] = jnp.zeros_like(acc_ref)

    xn = (x_ref[...].astype(jnp.float32) * s_ref[...]
          * g_ref[...].astype(jnp.float32)).astype(jnp.bfloat16)
    acc_ref[...] += jnp.dot(xn, w_ref[...], preferred_element_type=jnp.float32)

    @pl.when(k == pl.num_programs(2) - 1)
    def _():
        o_ref[...] = acc_ref[...].astype(o_ref.dtype)


def norm_matmul(x, scale, gamma, w, *, tm=256, tn=256, tk=512):
    """out = rmsnorm(x; gamma) @ w, with the norm applied in-VMEM on each x tile."""
    M, K = x.shape
    _, N = w.shape
    tm = _pick_tile(M, tm, 8)
    tn = _pick_tile(N, tn, 128)
    tk = _pick_tile(K, tk, 128)
    return pl.pallas_call(
        _norm_matmul_kernel,
        out_shape=jax.ShapeDtypeStruct((M, N), x.dtype),
        grid=(M // tm, N // tn, K // tk),
        in_specs=[
            pl.BlockSpec((tm, tk), lambda i, j, k: (i, k)),
            pl.BlockSpec((tm, 1), lambda i, j, k: (i, 0)),
            pl.BlockSpec((1, tk), lambda i, j, k: (0, k)),
            pl.BlockSpec((tk, tn), lambda i, j, k: (k, j)),
        ],
        out_specs=pl.BlockSpec((tm, tn), lambda i, j, k: (i, j)),
        scratch_shapes=[pltpu.VMEM((tm, tn), jnp.float32)],
        compiler_params=_MM_SEM,
    )(x, scale, gamma.reshape(1, K), w)


# ------------------- fused RMSNorm + dual matmul + SwiGLU ------------------

def _norm_swiglu_kernel(x_ref, s_ref, g_ref, w1_ref, w3_ref, o_ref,
                        accg_ref, accu_ref):
    k = pl.program_id(2)

    @pl.when(k == 0)
    def _():
        accg_ref[...] = jnp.zeros_like(accg_ref)
        accu_ref[...] = jnp.zeros_like(accu_ref)

    xn = (x_ref[...].astype(jnp.float32) * s_ref[...]
          * g_ref[...].astype(jnp.float32)).astype(jnp.bfloat16)
    accg_ref[...] += jnp.dot(xn, w1_ref[...], preferred_element_type=jnp.float32)
    accu_ref[...] += jnp.dot(xn, w3_ref[...], preferred_element_type=jnp.float32)

    @pl.when(k == pl.num_programs(2) - 1)
    def _():
        g = accg_ref[...]
        silu = g * pl.reciprocal(1.0 + jnp.exp(-g), approx=True)
        o_ref[...] = (silu * accu_ref[...]).astype(o_ref.dtype)


def norm_swiglu(x, scale, gamma, w1, w3, *, tm=256, tn=256, tk=512):
    """out = silu(rmsnorm(x) @ w1) * (rmsnorm(x) @ w3), fully fused."""
    M, K = x.shape
    _, N = w1.shape
    tm = _pick_tile(M, tm, 8)
    tn = _pick_tile(N, tn, 128)
    tk = _pick_tile(K, tk, 128)
    return pl.pallas_call(
        _norm_swiglu_kernel,
        out_shape=jax.ShapeDtypeStruct((M, N), x.dtype),
        grid=(M // tm, N // tn, K // tk),
        in_specs=[
            pl.BlockSpec((tm, tk), lambda i, j, k: (i, k)),
            pl.BlockSpec((tm, 1), lambda i, j, k: (i, 0)),
            pl.BlockSpec((1, tk), lambda i, j, k: (0, k)),
            pl.BlockSpec((tk, tn), lambda i, j, k: (k, j)),
            pl.BlockSpec((tk, tn), lambda i, j, k: (k, j)),
        ],
        out_specs=pl.BlockSpec((tm, tn), lambda i, j, k: (i, j)),
        scratch_shapes=[pltpu.VMEM((tm, tn), jnp.float32),
                        pltpu.VMEM((tm, tn), jnp.float32)],
        compiler_params=_MM_SEM,
    )(x, scale, gamma.reshape(1, K), w1, w3)


# ----------------------------- matmul + fused residual ---------------------

def _matmul_res_kernel(x_ref, w_ref, r_ref, o_ref, acc_ref):
    k = pl.program_id(2)

    @pl.when(k == 0)
    def _():
        acc_ref[...] = jnp.zeros_like(acc_ref)

    acc_ref[...] += jnp.dot(x_ref[...], w_ref[...],
                            preferred_element_type=jnp.float32)

    @pl.when(k == pl.num_programs(2) - 1)
    def _():
        o_ref[...] = (acc_ref[...] + r_ref[...].astype(jnp.float32)
                      ).astype(o_ref.dtype)


def matmul_residual(x, w, residual, *, tm=256, tn=256, tk=512):
    """out = x @ w + residual, residual add fused into the output store."""
    M, K = x.shape
    _, N = w.shape
    tm = _pick_tile(M, tm, 8)
    tn = _pick_tile(N, tn, 128)
    tk = _pick_tile(K, tk, 128)
    return pl.pallas_call(
        _matmul_res_kernel,
        out_shape=jax.ShapeDtypeStruct((M, N), residual.dtype),
        grid=(M // tm, N // tn, K // tk),
        in_specs=[
            pl.BlockSpec((tm, tk), lambda i, j, k: (i, k)),
            pl.BlockSpec((tk, tn), lambda i, j, k: (k, j)),
            pl.BlockSpec((tm, tn), lambda i, j, k: (i, j)),
        ],
        out_specs=pl.BlockSpec((tm, tn), lambda i, j, k: (i, j)),
        scratch_shapes=[pltpu.VMEM((tm, tn), jnp.float32)],
        compiler_params=_MM_SEM,
    )(x, w, residual)


# ----------------------------- flash causal attention ----------------------

def _flash_attn_kernel(q_ref, k_ref, v_ref, o_ref, m_sc, l_sc, acc_sc, *, scale):
    qi = pl.program_id(1)
    ki = pl.program_id(2)
    tq = q_ref.shape[1]
    tk = k_ref.shape[1]

    @pl.when(ki == 0)
    def _():
        m_sc[...] = jnp.full_like(m_sc, -jnp.inf)
        l_sc[...] = jnp.zeros_like(l_sc)
        acc_sc[...] = jnp.zeros_like(acc_sc)

    # Skip KV blocks that lie entirely above the causal diagonal.
    @pl.when(ki * tk <= qi * tq + (tq - 1))
    def _():
        q = q_ref[0]
        k = k_ref[0]
        s = jnp.dot(q, k.T, preferred_element_type=jnp.float32) * scale  # (tq, tk)
        row = qi * tq + jax.lax.broadcasted_iota(jnp.int32, (tq, tk), 0)
        col = ki * tk + jax.lax.broadcasted_iota(jnp.int32, (tq, tk), 1)
        s = jnp.where(col <= row, s, -1e30)

        m_new = jnp.maximum(m_sc[...], jnp.max(s, axis=-1, keepdims=True))
        alpha = jnp.exp(m_sc[...] - m_new)
        p = jnp.exp(s - m_new)
        l_sc[...] = alpha * l_sc[...] + jnp.sum(p, axis=-1, keepdims=True)
        acc_sc[...] = alpha * acc_sc[...] + jnp.dot(
            p.astype(v_ref.dtype), v_ref[0], preferred_element_type=jnp.float32)
        m_sc[...] = m_new

    @pl.when(ki == pl.num_programs(2) - 1)
    def _():
        o_ref[0] = (acc_sc[...] *
                    pl.reciprocal(l_sc[...], approx=True)).astype(o_ref.dtype)


def flash_attention(q, k, v, *, tq=256, tk=256):
    """q, k, v: (B*H, S, hd) bf16 -> (B*H, S, hd). Causal, online-softmax, blocked."""
    BH, S, hd = q.shape
    tq = _pick_tile(S, tq, 8)
    tk = _pick_tile(S, tk, 8)
    scale = 1.0 / math.sqrt(hd)
    qspec = pl.BlockSpec((1, tq, hd), lambda b, i, j: (b, i, 0))
    kspec = pl.BlockSpec((1, tk, hd), lambda b, i, j: (b, j, 0))
    return pl.pallas_call(
        functools.partial(_flash_attn_kernel, scale=scale),
        out_shape=jax.ShapeDtypeStruct((BH, S, hd), q.dtype),
        grid=(BH, S // tq, S // tk),
        in_specs=[qspec, kspec, kspec],
        out_specs=pl.BlockSpec((1, tq, hd), lambda b, i, j: (b, i, 0)),
        scratch_shapes=[pltpu.VMEM((tq, 1), jnp.float32),
                        pltpu.VMEM((tq, 1), jnp.float32),
                        pltpu.VMEM((tq, hd), jnp.float32)],
        compiler_params=pltpu.CompilerParams(
            dimension_semantics=("parallel", "parallel", "arbitrary")),
    )(q, k, v)


# ----------------------------- JAX glue -------------------------------------

def precompute_rope(head_dim, start_pos, seq_len, theta=10000.0):
    inv_freq = 1.0 / (theta ** (jnp.arange(0, head_dim, 2, dtype=jnp.float32) / head_dim))
    pos = jnp.arange(start_pos, start_pos + seq_len, dtype=jnp.float32)
    freqs = pos[:, None] * inv_freq[None, :]                  # (S, hd/2)
    return jnp.cos(freqs), jnp.sin(freqs)


def apply_rope(x, cos, sin):
    # x: (B, S, H, hd); interleaved-pair rotation (Meta's view_as_complex form).
    B, S, H, hd = x.shape
    xf = x.astype(jnp.float32).reshape(B, S, H, hd // 2, 2)
    xr, xi = xf[..., 0], xf[..., 1]
    c = cos[None, :, None, :]
    s = sin[None, :, None, :]
    out_r = xr * c - xi * s
    out_i = xr * s + xi * c
    return jnp.stack([out_r, out_i], axis=-1).reshape(B, S, H, hd).astype(x.dtype)


def init_params(key, *, vocab, dim, n_layers, n_heads, ffn_dim):
    def wgt(k, shape, scale=0.02):
        return (scale * jax.random.normal(k, shape, dtype=jnp.float32)).astype(jnp.bfloat16)

    keys = jax.random.split(key, 2 + 7 * n_layers)
    params = {
        "tok_emb": wgt(keys[0], (vocab, dim)),
        "final_norm": jnp.ones((dim,), jnp.bfloat16),
        "layers": [],
    }
    ki = 1
    for _ in range(n_layers):
        wq = wgt(keys[ki + 0], (dim, dim))
        wk = wgt(keys[ki + 1], (dim, dim))
        wv = wgt(keys[ki + 2], (dim, dim))
        layer = {
            "attn_norm": jnp.ones((dim,), jnp.bfloat16),
            "wqkv": jnp.concatenate([wq, wk, wv], axis=1),    # fused QKV weight
            "wo": wgt(keys[ki + 3], (dim, dim)),
            "ffn_norm": jnp.ones((dim,), jnp.bfloat16),
            "w1": wgt(keys[ki + 4], (dim, ffn_dim)),          # gate proj
            "w3": wgt(keys[ki + 5], (dim, ffn_dim)),          # up proj
            "w2": wgt(keys[ki + 6], (ffn_dim, dim)),          # down proj
        }
        params["layers"].append(layer)
        ki += 7
    return params


def llama_forward(params, tokens, start_pos, *, n_heads, eps=1e-5):
    """tokens: (B, S) int32 -> (B, S, dim) float32."""
    B, S = tokens.shape
    dim = params["tok_emb"].shape[1]
    head_dim = dim // n_heads
    M = B * S

    h = jnp.take(params["tok_emb"], tokens, axis=0).astype(jnp.bfloat16)  # (B,S,dim)
    cos, sin = precompute_rope(head_dim, start_pos, S)

    # TODO(synk): KV cache history (start_pos > 0 with previously cached tokens) is
    # not modeled; attention is causal over the provided chunk only (empty cache).
    h2d = h.reshape(M, dim)
    for layer in params["layers"]:
        # ---- attention block (fused RMSNorm + QKV matmul) ----
        s1 = rms_scale(h2d, eps)                                   # (M,1) f32
        qkv = norm_matmul(h2d, s1, layer["attn_norm"], layer["wqkv"])  # (M, 3*dim)
        q, k, v = jnp.split(qkv, 3, axis=-1)
        q = apply_rope(q.reshape(B, S, n_heads, head_dim), cos, sin)
        k = apply_rope(k.reshape(B, S, n_heads, head_dim), cos, sin)
        v = v.reshape(B, S, n_heads, head_dim)
        qh = q.transpose(0, 2, 1, 3).reshape(B * n_heads, S, head_dim)
        kh = k.transpose(0, 2, 1, 3).reshape(B * n_heads, S, head_dim)
        vh = v.transpose(0, 2, 1, 3).reshape(B * n_heads, S, head_dim)
        attn = flash_attention(qh, kh, vh)                         # (B*H, S, hd)
        attn = attn.reshape(B, n_heads, S, head_dim).transpose(0, 2, 1, 3)
        attn = attn.reshape(M, dim)
        h2d = matmul_residual(attn, layer["wo"], h2d)              # + residual

        # ---- feed-forward block (fused RMSNorm + SwiGLU) ----
        s2 = rms_scale(h2d, eps)
        ff = norm_swiglu(h2d, s2, layer["ffn_norm"], layer["w1"], layer["w3"])
        h2d = matmul_residual(ff, layer["w2"], h2d)                # + residual

    out = rmsnorm(h2d, params["final_norm"], eps)
    return out.reshape(B, S, dim).astype(jnp.float32)


# ----------------------------- main ----------------------------------------

if __name__ == "__main__":
    # Small, self-consistent config.
    VOCAB = 32
    DIM = 32
    N_HEADS = 4
    N_LAYERS = 2
    FFN_DIM = 64
    BATCH = 2
    SEQ = 8
    START_POS = 0

    key = jax.random.PRNGKey(0)
    pkey, tkey = jax.random.split(key)
    params = init_params(
        pkey, vocab=VOCAB, dim=DIM, n_layers=N_LAYERS, n_heads=N_HEADS, ffn_dim=FFN_DIM
    )
    tokens = jax.random.randint(tkey, (BATCH, SEQ), 0, VOCAB, dtype=jnp.int32)

    out = llama_forward(params, tokens, START_POS, n_heads=N_HEADS)
    out = jax.block_until_ready(out)
    assert out.shape == (BATCH, SEQ, DIM), out.shape
    assert bool(jnp.all(jnp.isfinite(out)))
    print("KERNEL_OK")
</pallas_src>

<mosaic_0001>
module attributes {stable_mosaic.version = 11 : i64} {
  func.func @_rms_scale_kernel(%arg0: i32, %arg1: memref<16x32xbf16, #tpu.memory_space<vmem>>, %arg2: memref<16x1xf32, #tpu.memory_space<vmem>>) attributes {dimension_semantics = [#tpu.dimension_semantics<parallel>], iteration_bounds = array<i64: 1>, scalar_prefetch = 0 : i64, scratch_operands = 0 : i64, tpu.core_type = #tpu.core_type<tc>, window_params = [{transform_indices = @transform_0, window_bounds = array<i64: 16, 32>}, {transform_indices = @transform_1, window_bounds = array<i64: 16, 1>}]} {
    %c0 = arith.constant 0 : index
    %c0_0 = arith.constant 0 : index
    %0 = vector.load %arg1[%c0, %c0_0] : memref<16x32xbf16, #tpu.memory_space<vmem>>, vector<16x32xbf16>
    %1 = arith.extf %0 : vector<16x32xbf16> to vector<16x32xf32>
    %2 = arith.mulf %1, %1 : vector<16x32xf32>
    %cst = arith.constant dense<0.000000e+00> : vector<16xf32>
    %3 = vector.multi_reduction <add>, %2, %cst [1] : vector<16x32xf32> to vector<16xf32>
    %4 = vector.shape_cast %3 : vector<16xf32> to vector<16x1xf32>
    %cst_1 = arith.constant 3.200000e+01 : f32
    %5 = vector.broadcast %cst_1 : f32 to vector<16x1xf32>
    %6 = arith.divf %4, %5 : vector<16x1xf32>
    %cst_2 = arith.constant 9.99999974E-6 : f32
    %7 = vector.broadcast %cst_2 : f32 to vector<16x1xf32>
    %8 = arith.addf %6, %7 : vector<16x1xf32>
    %9 = math.rsqrt %8 : vector<16x1xf32>
    %c0_3 = arith.constant 0 : index
    %c0_4 = arith.constant 0 : index
    %10 = vector.load %arg2[%c0_3, %c0_4] : memref<16x1xf32, #tpu.memory_space<vmem>>, vector<16x1xf32>
    tpu.vector_store %arg2[%c0_3, %c0_4], %9 {strides = array<i32>} : memref<16x1xf32, #tpu.memory_space<vmem>>, vector<16x1xf32>,
    return
  }
  func.func @transform_0(%arg0: i32) -> (i32, i32) {
    %c0_i32 = arith.constant 0 : i32
    %c0_i32_0 = arith.constant 0 : i32
    return %arg0, %c0_i32 : i32, i32
  }
  func.func @transform_1(%arg0: i32) -> (i32, i32) {
    %c0_i32 = arith.constant 0 : i32
    %c0_i32_0 = arith.constant 0 : i32
    return %arg0, %c0_i32 : i32, i32
  }
}

</mosaic_0001>

<bundles_post_ra>
// kernel: tpu_custom_call.1
= control target key start
LH: loop header
LB: loop body
LE: loop exit
PB: predicated region body
PF: predicated region fallthrough
CT: control target
= control target key end

     0   :  { %6 = vsyncpa [#allocation3], 0  ;;  %s116_s9 = smov [#allocation2]   ;;  %s117_s11 = smov 64   ;;  %s139_s0 = inlined_call_operand.hbm [shape: bf16[16,32], index: 0, kind: input, shape index: {}]   ;;  %s140_s1 = inlined_call_operand.vmem [shape: f32[16,1], index: 1, kind: output, shape index: {}]  }
   0x1   :  { %s11_s8 = sshll.u32 %s139_s0, 4  ;;  %s13_s10 = sshll.u32 %s116_s9, 4  ;;  %s12_s8 = int_to_ptr.hbm [resolvable:$true] %s11_s8  ;;  %s14_s10 = int_to_ptr.vmem [resolvable:$true] %s13_s10 }
   0x2   :  { %s118_s12 = smov 4  }
   0x3   :  { %19 = dma.hbm_to_vmem [thread:$0]  %s12_s8, 128, %s14_s10, [#allocation3], %s117_s11, %s117_s11, %s118_s12  }
   0x4   :  { %114 = dma.done.wait [#allocation3], 128  }
   0x5   :  { %115 = vsyncadd [#allocation3], 4294967168  ;;  %v77_v0 = vld [vmem:[#allocation2] sm:$0xff]   ;;  %vm30_vm0 = vcmask 261120   ;;  %v119_v7 = vmov 32.0   ;;  %vm68_vm3 = vcmask 7168  }
   0x6   :  { %v78_v1 = vunpack.c.l.bf16 %v77_v0  ;;  %v79_v3 = vunpack.c.h.bf16 %v77_v0  ;;  %84 = vrcp.f32 %v119_v7 }
   0x8   :  { %v28_v2 = vmul.f32 %v78_v1, %v78_v1  ;;  %v29_v5 = vmul.f32 %v79_v3, %v79_v3 }
   0xa   :  { %v31_v4 = vsel %vm30_vm0, %v28_v2, 0.0  ;;  %v34_v6 = vsel %vm30_vm0, %v29_v5, 0.0 }
   0xb   :  { %32 = vadd.xlane.f32.xlu0 %v31_v4 }
   0xc   :  { %v85_v8 = vpop.eup %84 }
   0xd   :  { %v38_v9 = vmul.f32 32.0, %v85_v8  ;;  %vm42_vm1 = vweird.f32 %v85_v8 }
   0xf   :  { %v39_v10 = vsub.f32 1.0, %v38_v9 }
  0x11   :  { %v40_v11 = vmul.f32 %v85_v8, %v39_v10 }
  0x13   :  { %35 = vadd.xlane.f32.xlu0 %v34_v6  ;;  %v41_v12 = vadd.f32 %v85_v8, %v40_v11 }
  0x15   :  { %v43_v13 = vsel %vm42_vm1, %v85_v8, %v41_v12 }
  0x7e   :  { %v33_v14 = vpop.xlane.xlu0 %32 }
  0x7f   :  { %v44_v15 = vmul.f32 %v43_v13, %v33_v14 }
  0x81   :  { %v46_v16 = vadd.f32 1e-05, %v44_v15 }
  0x83   :  { %86 = vrsqrt.f32 %v46_v16  ;;  %vm54_vm4 = vweird.f32 %v46_v16 }
  0x86   :  { %v36_v17 = vpop.xlane.xlu0 %35 }
  0x87   :  { %v45_v18 = vmul.f32 %v43_v13, %v36_v17 }
  0x89   :  { %v87_v19 = vpop.eup %86  ;;  %v47_v20 = vadd.f32 1e-05, %v45_v18 }
  0x8a   :  { %v49_v21 = vmul.f32 %v87_v19, %v46_v16  ;;  %vm55_vm2 = vweird.f32 %v87_v19 }
  0x8b   :  { %88 = vrsqrt.f32 %v47_v20  ;;  %vm56_vm5 = vmor %vm54_vm4, %vm55_vm2  ;;  %vm64_vm7 = vweird.f32 %v47_v20 }
  0x8c   :  { %v50_v22 = vmul.f32 %v87_v19, %v49_v21 }
  0x8e   :  { %v51_v23 = vmul.f32 0.5, %v50_v22 }
  0x90   :  { %v52_v24 = vsub.f32 1.5, %v51_v23 }
  0x91   :  { %v89_v25 = vpop.eup %88 }
  0x92   :  { %v53_v26 = vmul.f32 %v87_v19, %v52_v24  ;;  %v59_v27 = vmul.f32 %v89_v25, %v47_v20  ;;  %vm65_vm6 = vweird.f32 %v89_v25 }
  0x93   :  { %vm66_vm8 = vmor %vm64_vm7, %vm65_vm6 }
  0x94   :  { %v57_v28 = vsel %vm56_vm5, %v87_v19, %v53_v26  ;;  %v60_v29 = vmul.f32 %v89_v25, %v59_v27 }
  0x95   :  { %69 = vst.msk [vmem:[%s140_s1] sm:$0xff] %vm68_vm3, %v57_v28 }
  0x96   :  { %v61_v30 = vmul.f32 0.5, %v60_v29 }
  0x98   :  { %v62_v31 = vsub.f32 1.5, %v61_v30 }
  0x9a   :  { %v63_v32 = vmul.f32 %v89_v25, %v62_v31 }
  0x9c   :  { %v67_v33 = vsel %vm66_vm8, %v89_v25, %v63_v32 }
  0x9d   :  { %70 = vst.msk [vmem:[%s140_s1 + $0x8] sm:$0xff] %vm68_vm3, %v67_v33 }
  0x9e   :  { %75 = vsyncpa [#allocation3], 1 }

</bundles_post_ra>
